<compile_context>
chip_gen: v5e
topology: v5e:2x2
jax: 0.10.0
libtpu: 0.0.40
codegen_flags: <defaults>
</compile_context>

<pallas_src>
import jax
import jax.numpy as jnp
from jax.experimental import pallas as pl
from jax.experimental.pallas import tpu as pltpu


def _round_up(a, b):
    return ((a + b - 1) // b) * b


def _sublane(dtype):
    # second-minor tiling granularity for a given element size
    return max(8, 32 // jnp.dtype(dtype).itemsize)


def _packing(H):
    """Return (G, Hp): pack G consecutive positions into one 128-lane row."""
    if H % 128 == 0:
        return 1, H                    # already lane-dense
    if H < 128 and 128 % H == 0:
        g = 128 // H
        return g, g * H                # kron block-diagonal packing, Hp = 128
    return 1, _round_up(H, 128)        # ragged H: zero-pad features to 128 lanes


def _ffn_kernel(x_ref, w1t_ref, b1_ref, w2t_ref, b2_ref, o_ref):
    x = x_ref[...]                                   # (tm, Hp), original dtype
    xc = x.astype(w1t_ref.dtype)                     # cast for MXU only
    h = jnp.dot(xc, w1t_ref[...], preferred_element_type=jnp.float32)
    h = jnp.maximum(h + b1_ref[...], 0.0)            # bias + ReLU in f32
    y = jnp.dot(h.astype(w2t_ref.dtype), w2t_ref[...],
                preferred_element_type=jnp.float32)
    y = y + b2_ref[...] + x.astype(jnp.float32)      # residual in full precision
    o_ref[...] = y.astype(o_ref.dtype)


def prepare_ffn_params(w1, b1, w2, b2, *, compute_dtype=jnp.bfloat16):
    """Hoisted (once-per-parameter-update) weight prep: transpose, kron-pack or
    zero-pad to 128 lanes, cast to the MXU compute dtype."""
    if w1.ndim == 3:
        w1 = w1[..., 0]                # accept raw Conv1d weights (out, in, 1)
    if w2.ndim == 3:
        w2 = w2[..., 0]
    H = w1.shape[0]
    G, Hp = _packing(H)

    def prep_w(w):
        wt = w.T.astype(jnp.float32)                 # y = x @ W^T
        if G > 1:
            wt = jnp.kron(jnp.eye(G, dtype=jnp.float32), wt)     # (Hp, Hp)
        elif Hp != H:
            wt = jnp.pad(wt, ((0, Hp - H), (0, Hp - H)))
        return wt.astype(compute_dtype)

    def prep_b(b):
        b = b.astype(jnp.float32)
        if G > 1:
            b = jnp.tile(b, G)
        elif Hp != H:
            b = jnp.pad(b, (0, Hp - H))
        return b.reshape(1, Hp)

    return (H, G, Hp, prep_w(w1), prep_b(b1), prep_w(w2), prep_b(b2))


def pointwise_feedforward(x, w1=None, b1=None, w2=None, b2=None, *,
                          tile_m=1024, compute_dtype=jnp.bfloat16,
                          out_dtype=None, prepared=None):
    """x: (B, S, H).  w1, w2: (H, H) Conv1d weights (out, in) with the trailing
    kernel dim already squeezed (or (H, H, 1)).  b1, b2: (H,).
    Returns (B, S, H).  Pass `prepared=prepare_ffn_params(...)` to skip the
    per-call weight prep."""
    B, S, H = x.shape
    if prepared is None:
        prepared = prepare_ffn_params(w1, b1, w2, b2, compute_dtype=compute_dtype)
    Hparam, G, Hp, w1t, b1r, w2t, b2r = prepared
    assert Hparam == H, (Hparam, H)
    out_dtype = x.dtype if out_dtype is None else out_dtype
    M = B * S

    # x stays in its original dtype; padding only when strictly needed
    # (M not divisible by the packing factor, or ragged H) -> common case is a
    # free reshape, no extra HBM pass before the kernel.
    x2d = x.reshape(M, H)
    M_pack = _round_up(M, G)
    pad_rows = M_pack - M
    pad_cols = (Hp - H) if G == 1 else 0
    if pad_rows or pad_cols:
        x2d = jnp.pad(x2d, ((0, pad_rows), (0, pad_cols)))
    Mp = M_pack // G
    xp = x2d.reshape(Mp, Hp)

    # Row tiling: largest tile <= tile_m, preferring an even number of grid
    # steps (>= 2) so v7x's two TensorCores split the parallel axis evenly.
    SUB = max(_sublane(x.dtype), _sublane(out_dtype))
    tile_m = max(int(tile_m), SUB)
    if Mp <= SUB:
        tm = Mp                                      # single full-array block
    else:
        tm = min(tile_m, _round_up(Mp, SUB))
        steps = pl.cdiv(Mp, tm)
        if steps < 2:
            steps = 2
        elif steps % 2:
            steps += 1
        tm = max(SUB, min(tm, _round_up(pl.cdiv(Mp, steps), SUB)))
    grid_m = pl.cdiv(Mp, tm)

    xb = jnp.dtype(x.dtype).itemsize
    ob = jnp.dtype(out_dtype).itemsize
    cb = jnp.dtype(compute_dtype).itemsize

    # VMEM footprint: double-buffered streamed x/out tiles, resident weights
    # (double-buffered by default), biases, f32 intermediates.
    est = (2 * tm * Hp * xb
           + 2 * tm * Hp * ob
           + 2 * 2 * Hp * Hp * cb
           + 2 * 2 * Hp * 4
           + 3 * tm * Hp * 4)
    vmem_limit = int(min(max(2 * est, 4 << 20), 48 << 20))

    cost = pl.CostEstimate(
        flops=int(4 * Mp * Hp * Hp),
        transcendentals=0,
        bytes_accessed=int(Mp * Hp * (xb + ob) + 2 * Hp * Hp * cb + 2 * Hp * 4),
    )

    out = pl.pallas_call(
        _ffn_kernel,
        out_shape=jax.ShapeDtypeStruct((Mp, Hp), out_dtype),
        grid_spec=pltpu.PrefetchScalarGridSpec(
            num_scalar_prefetch=0,
            grid=(grid_m,),
            in_specs=[
                pl.BlockSpec((tm, Hp), lambda i: (i, 0)),    # x rows (streamed)
                pl.BlockSpec((Hp, Hp), lambda i: (0, 0)),    # W1^T (VMEM-resident)
                pl.BlockSpec((1, Hp), lambda i: (0, 0)),     # b1
                pl.BlockSpec((Hp, Hp), lambda i: (0, 0)),    # W2^T (VMEM-resident)
                pl.BlockSpec((1, Hp), lambda i: (0, 0)),     # b2
            ],
            out_specs=pl.BlockSpec((tm, Hp), lambda i: (i, 0)),
        ),
        compiler_params=pltpu.CompilerParams(
            dimension_semantics=("parallel",),
            vmem_limit_bytes=vmem_limit),
        cost_estimate=cost,
    )(xp, w1t, b1r, w2t, b2r)

    if G > 1:
        out2d = out.reshape(M_pack, H)[:M]
    else:
        out2d = out[:M, :H]
    return out2d.reshape(B, S, H)


if __name__ == "__main__":
    B, S, H = 2, 8, 32   # hidden_units = 32
    key = jax.random.PRNGKey(0)
    kx, k1, k2, k3, k4 = jax.random.split(key, 5)

    x = jax.random.normal(kx, (B, S, H), dtype=jnp.float32)
    # Deterministic synthetic parameters (Conv1d(H, H, kernel_size=1) weights).
    w1 = jax.random.normal(k1, (H, H), dtype=jnp.float32) * 0.05
    b1 = jax.random.normal(k2, (H,), dtype=jnp.float32) * 0.05
    w2 = jax.random.normal(k3, (H, H), dtype=jnp.float32) * 0.05
    b2 = jax.random.normal(k4, (H,), dtype=jnp.float32) * 0.05

    params = prepare_ffn_params(w1, b1, w2, b2)      # hoisted weight prep
    y = pointwise_feedforward(x, prepared=params)
    y = jax.block_until_ready(y)

    # Pure-JAX f32 reference (same math as the PyTorch module in eval mode).
    # Matmuls run in bf16 with f32 accumulation; residual/bias paths stay f32.
    h_ref = jnp.maximum(jnp.einsum("bsh,oh->bso", x, w1) + b1, 0.0)
    y_ref = jnp.einsum("bsh,oh->bso", h_ref, w2) + b2 + x
    assert y.shape == y_ref.shape
    err = float(jnp.max(jnp.abs(y - y_ref)))
    assert jnp.allclose(y, y_ref, atol=2e-2, rtol=2e-2), err

    print("KERNEL_OK")
</pallas_src>

<mosaic_0001>
module attributes {stable_mosaic.version = 11 : i64} {
  func.func @_ffn_kernel(%arg0: i32, %arg1: memref<4x128xf32, #tpu.memory_space<vmem>>, %arg2: memref<128x128xbf16, #tpu.memory_space<vmem>>, %arg3: memref<1x128xf32, #tpu.memory_space<vmem>>, %arg4: memref<128x128xbf16, #tpu.memory_space<vmem>>, %arg5: memref<1x128xf32, #tpu.memory_space<vmem>>, %arg6: memref<4x128xf32, #tpu.memory_space<vmem>>) attributes {dimension_semantics = [#tpu.dimension_semantics<parallel>], iteration_bounds = array<i64: 1>, scalar_prefetch = 0 : i64, scratch_operands = 0 : i64, tpu.core_type = #tpu.core_type<tc>, window_params = [{transform_indices = @transform_0, window_bounds = array<i64: 4, 128>}, {pipeline_mode = #tpu.pipeline_mode<synchronous>, transform_indices = @transform_1, window_bounds = array<i64: 128, 128>}, {pipeline_mode = #tpu.pipeline_mode<synchronous>, transform_indices = @transform_2, window_bounds = array<i64: 1, 128>}, {pipeline_mode = #tpu.pipeline_mode<synchronous>, transform_indices = @transform_3, window_bounds = array<i64: 128, 128>}, {pipeline_mode = #tpu.pipeline_mode<synchronous>, transform_indices = @transform_4, window_bounds = array<i64: 1, 128>}, {transform_indices = @transform_5, window_bounds = array<i64: 4, 128>}]} {
    %c0 = arith.constant 0 : index
    %c0_0 = arith.constant 0 : index
    %0 = vector.load %arg1[%c0, %c0_0] : memref<4x128xf32, #tpu.memory_space<vmem>>, vector<4x128xf32>
    %1 = arith.truncf %0 : vector<4x128xf32> to vector<4x128xbf16>
    %c0_1 = arith.constant 0 : index
    %c0_2 = arith.constant 0 : index
    %2 = vector.load %arg2[%c0_1, %c0_2] : memref<128x128xbf16, #tpu.memory_space<vmem>>, vector<128x128xbf16>
    %cst = arith.constant dense<0.000000e+00> : vector<4x128xf32>
    %3 = tpu.matmul %1, %2, %cst {dimension_numbers = #tpu.dot_dimension_numbers<[1], [0], [0], [1], [0, 0, 1, 1], [], []>} : vector<4x128xbf16>, vector<128x128xbf16>, vector<4x128xf32> -> vector<4x128xf32>
    %c0_3 = arith.constant 0 : index
    %c0_4 = arith.constant 0 : index
    %4 = vector.load %arg3[%c0_3, %c0_4] : memref<1x128xf32, #tpu.memory_space<vmem>>, vector<1x128xf32>
    %5 = vector.broadcast %4 : vector<1x128xf32> to vector<4x128xf32>
    %6 = arith.addf %3, %5 : vector<4x128xf32>
    %cst_5 = arith.constant 0.000000e+00 : f32
    %7 = vector.broadcast %cst_5 : f32 to vector<4x128xf32>
    %8 = arith.maximumf %6, %7 : vector<4x128xf32>
    %9 = arith.truncf %8 : vector<4x128xf32> to vector<4x128xbf16>
    %c0_6 = arith.constant 0 : index
    %c0_7 = arith.constant 0 : index
    %10 = vector.load %arg4[%c0_6, %c0_7] : memref<128x128xbf16, #tpu.memory_space<vmem>>, vector<128x128xbf16>
    %cst_8 = arith.constant dense<0.000000e+00> : vector<4x128xf32>
    %11 = tpu.matmul %9, %10, %cst_8 {dimension_numbers = #tpu.dot_dimension_numbers<[1], [0], [0], [1], [0, 0, 1, 1], [], []>} : vector<4x128xbf16>, vector<128x128xbf16>, vector<4x128xf32> -> vector<4x128xf32>
    %c0_9 = arith.constant 0 : index
    %c0_10 = arith.constant 0 : index
    %12 = vector.load %arg5[%c0_9, %c0_10] : memref<1x128xf32, #tpu.memory_space<vmem>>, vector<1x128xf32>
    %13 = vector.broadcast %12 : vector<1x128xf32> to vector<4x128xf32>
    %14 = arith.addf %11, %13 : vector<4x128xf32>
    %15 = arith.addf %14, %0 : vector<4x128xf32>
    %c0_11 = arith.constant 0 : index
    %c0_12 = arith.constant 0 : index
    %16 = vector.load %arg6[%c0_11, %c0_12] : memref<4x128xf32, #tpu.memory_space<vmem>>, vector<4x128xf32>
    tpu.vector_store %arg6[%c0_11, %c0_12], %15 {strides = array<i32>} : memref<4x128xf32, #tpu.memory_space<vmem>>, vector<4x128xf32>,
    return
  }
  func.func @transform_0(%arg0: i32) -> (i32, i32) {
    %c0_i32 = arith.constant 0 : i32
    %c0_i32_0 = arith.constant 0 : i32
    return %arg0, %c0_i32 : i32, i32
  }
  func.func @transform_1(%arg0: i32) -> (i32, i32) {
    %c0_i32 = arith.constant 0 : i32
    %c0_i32_0 = arith.constant 0 : i32
    %c0_i32_1 = arith.constant 0 : i32
    return %c0_i32, %c0_i32_0 : i32, i32
  }
  func.func @transform_2(%arg0: i32) -> (i32, i32) {
    %c0_i32 = arith.constant 0 : i32
    %c0_i32_0 = arith.constant 0 : i32
    %c0_i32_1 = arith.constant 0 : i32
    return %c0_i32, %c0_i32_0 : i32, i32
  }
  func.func @transform_3(%arg0: i32) -> (i32, i32) {
    %c0_i32 = arith.constant 0 : i32
    %c0_i32_0 = arith.constant 0 : i32
    %c0_i32_1 = arith.constant 0 : i32
    return %c0_i32, %c0_i32_0 : i32, i32
  }
  func.func @transform_4(%arg0: i32) -> (i32, i32) {
    %c0_i32 = arith.constant 0 : i32
    %c0_i32_0 = arith.constant 0 : i32
    %c0_i32_1 = arith.constant 0 : i32
    return %c0_i32, %c0_i32_0 : i32, i32
  }
  func.func @transform_5(%arg0: i32) -> (i32, i32) {
    %c0_i32 = arith.constant 0 : i32
    %c0_i32_0 = arith.constant 0 : i32
    return %arg0, %c0_i32 : i32, i32
  }
}

</mosaic_0001>

<bundles_post_ra>
// kernel: tpu_custom_call.1
= control target key start
LH: loop header
LB: loop body
LE: loop exit
PB: predicated region body
PF: predicated region fallthrough
CT: control target
= control target key end

     0   :  { %10 = vsyncpa [#allocation3], 0  ;;  %s496_s0 = inlined_call_operand.hbm [shape: f32[4,128], index: 0, kind: input, shape index: {}]   ;;  %s497_s1 = inlined_call_operand.hbm [shape: bf16[128,128], index: 1, kind: input, shape index: {}]   ;;  %s498_s2 = inlined_call_operand.vmem [shape: f32[1,128], index: 2, kind: input, shape index: {}]   ;;  %s499_s3 = inlined_call_operand.hbm [shape: bf16[128,128], index: 3, kind: input, shape index: {}]   ;;  %s500_s4 = inlined_call_operand.vmem [shape: f32[1,128], index: 4, kind: input, shape index: {}]   ;;  %s501_s5 = inlined_call_operand.hbm [shape: f32[4,128], index: 5, kind: output, shape index: {}]  }
   0x1   :  { %11 = vsyncpa [#allocation6], 0  ;;  %s28_s20 = sshll.u32 %s497_s1, 4  ;;  %s29_s20 = int_to_ptr.hbm [resolvable:$true] %s28_s20 }
   0x2   :  { %12 = vsyncpa [#allocation4], 0  ;;  %s442_s21 = smov [#allocation5]   ;;  %s18_s25 = sshll.u32 %s496_s0, 4  ;;  %s19_s25 = int_to_ptr.hbm [resolvable:$true] %s18_s25 }
   0x3   :  { %s30_s22 = sshll.u32 %s442_s21, 4  ;;  %s443_s26 = smov 64   ;;  %s31_s22 = int_to_ptr.vmem [resolvable:$true] %s30_s22 }
   0x4   :  { %s444_s27 = smov 4   ;;  %s445_s28 = smov [#allocation2]  }
   0x5   :  { %36 = dma.hbm_to_vmem [thread:$0]  %s29_s20, 1024, %s31_s22, [#allocation6], %s443_s26, %s443_s26, %s444_s27  }
   0x6   :  { %s20_s29 = sshll.u32 %s445_s28, 4  ;;  %s43_s7 = sshll.u32 %s499_s3, 4  ;;  %s21_s29 = int_to_ptr.vmem [resolvable:$true] %s20_s29  ;;  %s44_s7 = int_to_ptr.hbm [resolvable:$true] %s43_s7 }
   0x7   :  { %23 = dma.hbm_to_vmem [thread:$0]  %s19_s25, 64, %s21_s29, [#allocation3]  }
   0x8   :  { %s446_s1 = smov [#allocation7]  }
   0x9   :  { %s45_s8 = sshll.u32 %s446_s1, 4  ;;  %s46_s8 = int_to_ptr.vmem [resolvable:$true] %s45_s8 }
   0xa   :  { %51 = dma.hbm_to_vmem [thread:$0]  %s44_s7, 1024, %s46_s8, [#allocation6], %s443_s26, %s443_s26, %s444_s27  }
   0xb   :  { %436 = dma.done.wait [#allocation3], 64  }
   0xc   :  { %437 = vsyncadd [#allocation3], 4294967232 }
   0xd   :  { %438 = dma.done.wait [#allocation6], 2048  }
   0xe   :  { %439 = vsyncadd [#allocation6], 4294965248  ;;  %v323_v0 = vld [vmem:[#allocation5 + $0x38] sm:$0xff]  ;;  %v322_v1 = vld [vmem:[#allocation5 + $0x30] sm:$0xff]  ;;  %s447_s11 = smov [#allocation8]   ;;  %s241_s15 = sshll.u32 %s501_s5, 4  ;;  %s242_s15 = int_to_ptr.hbm [resolvable:$true] %s241_s15 }
   0xf   :  { %136 = vmatpush.bf16.msra.mxu0 %v323_v0  ;;  %v331_v2 = vld [vmem:[#allocation7 + $0x38] sm:$0xff]  ;;  %v330_v3 = vld [vmem:[#allocation7 + $0x30] sm:$0xff]  ;;  %v321_v4 = vld [vmem:[#allocation5 + $0x28] sm:$0xff]  ;;  %s239_s12 = sshll.u32 %s447_s11, 4  ;;  %s240_s12 = int_to_ptr.vmem [resolvable:$true] %s239_s12 }
  0x10   :  { %219 = vmatpush.bf16.msra.mxu1 %v331_v2  ;;  %v329_v5 = vld [vmem:[#allocation7 + $0x28] sm:$0xff]  ;;  %v320_v6 = vld [vmem:[#allocation5 + $0x20] sm:$0xff]  ;;  %v319_v8 = vld [vmem:[#allocation5 + $0x18] sm:$0xff] }
  0x11   :  { %v328_v7 = vld [vmem:[#allocation7 + $0x20] sm:$0xff]  ;;  %v327_v9 = vld [vmem:[#allocation7 + $0x18] sm:$0xff]  ;;  %v318_v10 = vld [vmem:[#allocation5 + $0x10] sm:$0xff] }
  0x12   :  { %v326_v11 = vld [vmem:[#allocation7 + $0x10] sm:$0xff]  ;;  %v317_v12 = vld [vmem:[#allocation5 + $0x8] sm:$0xff]  ;;  %v316_v13 = vld [vmem:[#allocation5] sm:$0xff] }
  0x13   :  { %137 = vmatpush.bf16.msra.mxu0 %v322_v1  ;;  %v66_v14 = vld [vmem:[#allocation2] sm:$0xf]  ;;  %v325_v16 = vld [vmem:[#allocation7 + $0x8] sm:$0xff]  ;;  %v324_v17 = vld [vmem:[#allocation7] sm:$0xff] }
  0x14   :  { %220 = vmatpush.bf16.msra.mxu1 %v330_v3  ;;  %v67_v15 = vpack.c.bf16 %v66_v14, %v66_v14  ;;  %v338_v18 = vld [vmem:[%s498_s2] ss:$0 sm:$0xff] }
  0x15   :  { %v339_v24 = vld [vmem:[%s500_s4] ss:$0 sm:$0xff] }
  0x17   :  { %138 = vmatpush.bf16.msra.mxu0 %v321_v4 }
  0x18   :  { %221 = vmatpush.bf16.msra.mxu1 %v329_v5 }
  0x1b   :  { %139 = vmatpush.bf16.msra.mxu0 %v320_v6 }
  0x1c   :  { %222 = vmatpush.bf16.msra.mxu1 %v328_v7 }
  0x1f   :  { %140 = vmatpush.bf16.msra.mxu0 %v319_v8 }
  0x20   :  { %223 = vmatpush.bf16.msra.mxu1 %v327_v9 }
  0x23   :  { %141 = vmatpush.bf16.msra.mxu0 %v318_v10 }
  0x24   :  { %224 = vmatpush.bf16.msra.mxu1 %v326_v11 }
  0x27   :  { %142 = vmatpush.bf16.msra.mxu0 %v317_v12 }
  0x28   :  { %225 = vmatpush.bf16.msra.mxu1 %v325_v16 }
  0x2b   :  { %143 = vmatpush.bf16.msra.mxu0 %v316_v13 }
  0x2c   :  { %226 = vmatpush.bf16.msra.mxu1 %v324_v17 }
  0x2e   :  { %144 = vmatmul.bf16.vlgmr.msra.gmra.mxu0 %v67_v15 }
  0xab   :  { %v145_v19 = vpop.f32.mrf.mxu0 }
  0xac   :  { %v146_v20 = vadd.f32 %v338_v18, %v145_v19 }
  0xae   :  { %v149_v21 = vmax.f32 %v146_v20, 0.0 }
  0xb0   :  { %v150_v22 = vpack.c.bf16 %v149_v21, %v149_v21 }
  0xb2   :  { %227 = vmatmul.bf16.vlgmr.msra.gmra.mxu1 %v150_v22 }
  0xb3   :  { %v147_v23 = vpop.f32.mrf.mxu0 }
 0x12f   :  { %v228_v25 = vpop.f32.mrf.mxu1 }
 0x130   :  { %v229_v26 = vadd.f32 %v339_v24, %v228_v25 }
 0x132   :  { %v232_v27 = vadd.f32 %v229_v26, %v66_v14 }
 0x134   :  { %233 = vst [vmem:[#allocation8] sm:$0xf] %v232_v27 }
 0x135   :  { %244 = dma.vmem_to_hbm [thread:$0]  %s240_s12, 64, %s242_s15, [#allocation4]  }
 0x137   :  { %v230_v28 = vpop.f32.mrf.mxu1 }
 0x138   :  { %440 = dma.done.wait [#allocation4], 64  }
 0x139   :  { %441 = vsyncadd [#allocation4], 4294967232 }
 0x13a   :  { %249 = vsyncpa [#allocation3], 1 }
 0x13b   :  { %250 = vsyncpa [#allocation6], 1 }
 0x13c   :  { %251 = vsyncpa [#allocation4], 1 }

</bundles_post_ra>
